<compile_context>
chip_gen: v7x
topology: tpu7x:2x2x1
jax: 0.10.0
libtpu: 0.0.40
codegen_flags: <defaults>
</compile_context>

<pallas_src>
import functools

import jax
import jax.numpy as jnp
from jax.experimental import pallas as pl
from jax.experimental.pallas import tpu as pltpu


def _round_up(x: int, m: int) -> int:
    return (x + m - 1) // m * m


def _activate(x, act_fn: str):
    if act_fn == "tanh":
        return jnp.tanh(x)            # EUP slot — free alongside the DMA-bound loop
    if act_fn == "relu":
        return jnp.maximum(x, 0.0)    # VPU
    return x                          # identity


def _embed_kernel(x_ref, w_ref, b_ref, o_ref, *, act_fn: str):
    # (tm, F) @ (F, E) -> (tm, E): MXU matmul with f32 accumulation, fused
    # bias add (sublane-broadcast of the (1, E) row) and activation, one store.
    acc = jnp.dot(x_ref[...], w_ref[...], preferred_element_type=jnp.float32)
    acc = acc + b_ref[...].astype(jnp.float32)
    acc = _activate(acc, act_fn)
    o_ref[...] = acc.astype(o_ref.dtype)


def continuous_feature_embedding(features, feature_embeddings, bias,
                                 act_fn: str = "tanh",
                                 tile_rows: int = 8192,
                                 out_dtype=None):
    """features: (B, S, F); feature_embeddings: (F, E); bias: (1, E) -> (B, S, E)."""
    B, S, F = features.shape
    F2, E = feature_embeddings.shape
    assert F == F2
    assert bias.shape == (1, E)
    out_dtype = features.dtype if out_dtype is None else out_dtype

    M = B * S
    x2d = features.reshape(M, F)          # contiguous reshape: no data movement

    # Row tile: a multiple of 128 for large M (aligned, full-size blocks except
    # the clipped tail).  If the whole problem fits one tile, use M exactly —
    # a block dim equal to the full array dim always satisfies the tiling rule.
    tile_rows = max(128, _round_up(tile_rows, 128))
    tm = M if M <= tile_rows else tile_rows
    grid = (pl.cdiv(M, tm),)              # ragged tail handled by Pallas clipping

    cost = pl.CostEstimate(
        flops=2 * M * F * E,
        transcendentals=(M * E if act_fn == "tanh" else 0),
        bytes_accessed=(x2d.size * x2d.dtype.itemsize
                        + feature_embeddings.size * feature_embeddings.dtype.itemsize
                        + bias.size * bias.dtype.itemsize
                        + M * E * jnp.dtype(out_dtype).itemsize),
    )

    out2d = pl.pallas_call(
        functools.partial(_embed_kernel, act_fn=act_fn),
        out_shape=jax.ShapeDtypeStruct((M, E), out_dtype),
        grid_spec=pltpu.PrefetchScalarGridSpec(
            num_scalar_prefetch=0,
            grid=grid,
            in_specs=[
                pl.BlockSpec((tm, F), lambda i: (i, 0)),   # streamed row tile
                pl.BlockSpec((F, E), lambda i: (0, 0)),    # W resident in VMEM
                pl.BlockSpec((1, E), lambda i: (0, 0)),    # bias resident in VMEM
            ],
            out_specs=pl.BlockSpec((tm, E), lambda i: (i, 0)),
        ),
        compiler_params=pltpu.CompilerParams(
            dimension_semantics=("parallel",)),   # megacore / v7x TC sharding
        cost_estimate=cost,
    )(x2d, feature_embeddings, bias)

    return out2d.reshape(B, S, E)


if __name__ == "__main__":
    # Small shapes consistent with the module: batch=2, seq=8, num_features=4,
    # embedding_size=32.
    B, S, F, E = 2, 8, 4, 32

    key = jax.random.PRNGKey(0)
    k_feat, k_emb = jax.random.split(key)

    feature_embeddings = jax.random.normal(k_emb, (F, E), dtype=jnp.float32)
    bias = jnp.zeros((1, E), dtype=jnp.float32)
    features = jax.random.normal(k_feat, (B, S, F), dtype=jnp.float32)

    out = continuous_feature_embedding(features, feature_embeddings, bias, act_fn="tanh")
    out = jax.block_until_ready(out)

    # Pure-JAX reference of the PyTorch semantics.
    ref = jnp.tanh(
        (features[..., None] * feature_embeddings[None, None]).sum(axis=2) + bias
    )
    assert out.shape == (B, S, E)
    assert jnp.allclose(out, ref, atol=1e-5, rtol=1e-5)

    print("KERNEL_OK")
</pallas_src>

<mosaic_0001>
module attributes {stable_mosaic.version = 11 : i64} {
  func.func @_embed_kernel(%arg0: i32, %arg1: memref<16x4xf32, #tpu.memory_space<vmem>>, %arg2: memref<4x32xf32, #tpu.memory_space<vmem>>, %arg3: memref<1x32xf32, #tpu.memory_space<vmem>>, %arg4: memref<16x32xf32, #tpu.memory_space<vmem>>) attributes {dimension_semantics = [#tpu.dimension_semantics<parallel>], iteration_bounds = array<i64: 1>, scalar_prefetch = 0 : i64, scratch_operands = 0 : i64, tpu.core_type = #tpu.core_type<tc>, window_params = [{transform_indices = @transform_0, window_bounds = array<i64: 16, 4>}, {pipeline_mode = #tpu.pipeline_mode<synchronous>, transform_indices = @transform_1, window_bounds = array<i64: 4, 32>}, {pipeline_mode = #tpu.pipeline_mode<synchronous>, transform_indices = @transform_2, window_bounds = array<i64: 1, 32>}, {transform_indices = @transform_3, window_bounds = array<i64: 16, 32>}]} {
    %c0 = arith.constant 0 : index
    %c0_0 = arith.constant 0 : index
    %0 = vector.load %arg1[%c0, %c0_0] : memref<16x4xf32, #tpu.memory_space<vmem>>, vector<16x4xf32>
    %c0_1 = arith.constant 0 : index
    %c0_2 = arith.constant 0 : index
    %1 = vector.load %arg2[%c0_1, %c0_2] : memref<4x32xf32, #tpu.memory_space<vmem>>, vector<4x32xf32>
    %cst = arith.constant dense<0.000000e+00> : vector<16x32xf32>
    %2 = tpu.matmul %0, %1, %cst {dimension_numbers = #tpu.dot_dimension_numbers<[1], [0], [0], [1], [0, 0, 1, 1], [], []>} : vector<16x4xf32>, vector<4x32xf32>, vector<16x32xf32> -> vector<16x32xf32>
    %c0_3 = arith.constant 0 : index
    %c0_4 = arith.constant 0 : index
    %3 = vector.load %arg3[%c0_3, %c0_4] : memref<1x32xf32, #tpu.memory_space<vmem>>, vector<1x32xf32>
    %4 = vector.broadcast %3 : vector<1x32xf32> to vector<16x32xf32>
    %5 = arith.addf %2, %4 : vector<16x32xf32>
    %6 = math.tanh %5 : vector<16x32xf32>
    %c0_5 = arith.constant 0 : index
    %c0_6 = arith.constant 0 : index
    %7 = vector.load %arg4[%c0_5, %c0_6] : memref<16x32xf32, #tpu.memory_space<vmem>>, vector<16x32xf32>
    tpu.vector_store %arg4[%c0_5, %c0_6], %6 {strides = array<i32>} : memref<16x32xf32, #tpu.memory_space<vmem>>, vector<16x32xf32>,
    return
  }
  func.func @transform_0(%arg0: i32) -> (i32, i32) {
    %c0_i32 = arith.constant 0 : i32
    %c0_i32_0 = arith.constant 0 : i32
    return %arg0, %c0_i32 : i32, i32
  }
  func.func @transform_1(%arg0: i32) -> (i32, i32) {
    %c0_i32 = arith.constant 0 : i32
    %c0_i32_0 = arith.constant 0 : i32
    %c0_i32_1 = arith.constant 0 : i32
    return %c0_i32, %c0_i32_0 : i32, i32
  }
  func.func @transform_2(%arg0: i32) -> (i32, i32) {
    %c0_i32 = arith.constant 0 : i32
    %c0_i32_0 = arith.constant 0 : i32
    %c0_i32_1 = arith.constant 0 : i32
    return %c0_i32, %c0_i32_0 : i32, i32
  }
  func.func @transform_3(%arg0: i32) -> (i32, i32) {
    %c0_i32 = arith.constant 0 : i32
    %c0_i32_0 = arith.constant 0 : i32
    return %arg0, %c0_i32 : i32, i32
  }
}

</mosaic_0001>

<bundles_post_ra>
// kernel: tpu_custom_call.1
= control target key start
LH: loop header
LB: loop body
LE: loop exit
PB: predicated region body
PF: predicated region fallthrough
CT: control target
= control target key end

     0   :  { %vm32_vm0 = vcmask 1043456   ;;  %vm25_vm1 = vcmask 31744   ;;  %s222_s0 = inlined_call_operand.vmem [shape: f32[16,4], index: 0, kind: input, shape index: {}]   ;;  %s223_s1 = inlined_call_operand.vmem [shape: f32[4,32], index: 1, kind: input, shape index: {}]   ;;  %s224_s2 = inlined_call_operand.vmem [shape: f32[1,32], index: 2, kind: input, shape index: {}]   ;;  %s225_s3 = inlined_call_operand.hbm [shape: f32[16,32], index: 3, kind: output, shape index: {}]  }
   0x1   :  { %v17_v0 = vld [vmem:[%s223_s1] sm:$0xf]  ;;  %v16_v2 = vld [vmem:[%s222_s0 + $0x8] sm:$0xff] }
   0x2   :  { %v15_v1 = vld [vmem:[%s222_s0] sm:$0xff]  ;;  %139 = vmatprep.subr.msk.mxu0 %vm32_vm0, %v17_v0 }
   0x3   :  { %141 = vmatprep.mubr.msk.f32.mxu0 %vm25_vm1, %v15_v1 }
   0x4   :  { %8 = vsyncpa [#allocation3], 0  ;;  %140 = vmatpush3.msk.msra.mxu0 %vm32_vm0, %v17_v0  ;;  %v132_v3 = vld [vmem:[%s224_s2] ss:$0 sm:$0xff]  ;;  %s175_s1 = smov [#allocation2]   ;;  %vm113_vm2 = vcmask 261120  }
   0x5   :  { %142 = vmatmul.mubr.msk.f32.vlgmr.msra.gmra.mrb[0].mxu0 %vm25_vm1, %v16_v2  ;;  %s121_s20 = sshll.u32 %s175_s1, 4  ;;  %s122_s20 = int_to_ptr.vmem [resolvable:$true] %s121_s20 }
   0x6   :  { %s151_s0 = scalar_lea.vmem %s122_s20, 256  ;;  %p156_p1 = scmp.lt.s32.totalorder %s122_s20, %s122_s20 }
   0x7   :  { %p152_p0 = scmp.ne.s32.totalorder %s122_s20, %s151_s0  ;;  %p157_p2 = scmp.lt.s32.totalorder %s151_s0, %s151_s0 }
   0x9   :  { %p158_p3 = por %p157_p2, %p156_p1 }
   0xb   :  { %p159_p4 = pnand %p158_p3, %p152_p0 }
  0xd8   :  { %v143_v4 = vpop.f32.mrb[0].mxu0 }
  0xd9   :  { %v108_v5 = vadd.f32 %v143_v4, %v132_v3  ;;  %v102_v6 = vpop.f32.mrb[1].mxu0 }
  0xda   :  { %v103_v7 = vadd.f32 %v132_v3, %v102_v6 }
  0xdb   :  { %147 = vtanh.f32 %v108_v5 }
  0xdc   :  { %149 = vtanh.f32 %v103_v7 }
  0xe5   :  { %v148_v8 = vpop.eup %147 }
  0xe6   :  { %v150_v9 = vpop.eup %149  ;;  %115 = vst.msk [vmem:[#allocation2 + $0x8] sm:$0xff] %vm113_vm2, %v148_v8 }
  0xe7   :  { %114 = vst.msk [vmem:[#allocation2] sm:$0xff] %vm113_vm2, %v150_v9 }
  0xe8   :  { %162 = shalt.err (!%p159_p4)
}
  0xe9   :  { %s163_s22 = scalar_lea.hbm %s225_s3, 256 }
  0xea   :  { %p164_p5 = scmp.ne.s32.totalorder %s225_s3, %s163_s22  ;;  %p167_p6 = scmp.lt.u32.totalorder %s163_s22, %s225_s3 }
  0xec   :  { %p169_p7 = pnand %p167_p6, %p164_p5 }
  0xee   :  { %172 = shalt.err (!%p169_p7)
}
  0xef   :  { %s176_s27 = smov 128   ;;  %s177_s28 = smov 8  }
  0xf0   :  { %127 = dma.vmem_to_hbm [thread:$0]  %s122_s20, 256, %s225_s3, [#allocation3], %s176_s27, %s176_s27, %s177_s28  }
  0xf1   :  { %173 = dma.done.wait [#allocation3], 256  }
  0xf2   :  { %174 = vsyncadd [#allocation3], 4294967040 }
  0xf3   :  { %131 = vsyncpa [#allocation3], 1 }

</bundles_post_ra>
